<compile_context>
chip_gen: v6e
topology: v6e:2x2x1
jax: 0.10.0
libtpu: 0.0.40
codegen_flags: <defaults>
</compile_context>

<pallas_src>
import functools
import math

import jax
import jax.numpy as jnp
from jax.experimental import pallas as pl
from jax.experimental.pallas import tpu as pltpu


# ----------------------------- Pallas kernel ------------------------------- #

def _residual_block_kernel(x_ref, ln1_w_ref, ln1_b_ref, wqkv_ref, bqkv_ref,
                           wo_ref, bo_ref, ln2_w_ref, ln2_b_ref,
                           wfc_ref, bfc_ref, wproj_ref, bproj_ref,
                           o_ref, attn_ref, *, n_head):
    """Per-batch-element fused block:  out = MLP(Attn(x))  with residuals."""
    x = x_ref[0].astype(jnp.float32)               # (L, D) f32 working copy
    L, D = x.shape
    hd = D // n_head
    scale = 1.0 / math.sqrt(hd)

    # ---- LayerNorm 1 (fp32, eps=1e-5; matches LayerNorm.float()) ----
    mean = jnp.mean(x, axis=-1, keepdims=True)
    var = jnp.mean((x - mean) ** 2, axis=-1, keepdims=True)
    ln1 = (x - mean) * jax.lax.rsqrt(var + 1e-5)
    ln1 = ln1 * ln1_w_ref[...] + ln1_b_ref[...]

    # ---- in_proj: bf16 operands, f32 accumulation on the MXU ----
    qkv = jnp.dot(ln1.astype(jnp.bfloat16), wqkv_ref[...],
                  preferred_element_type=jnp.float32) + bqkv_ref[...]
    # scale q once for all heads; cast q/k/v to bf16 once (outside head loop)
    qb = (qkv[:, 0 * D:1 * D] * scale).astype(jnp.bfloat16)
    kb = qkv[:, 1 * D:2 * D].astype(jnp.bfloat16)
    vb = qkv[:, 2 * D:3 * D].astype(jnp.bfloat16)

    # ---- per-head attention; head outputs land in a bf16 VMEM scratch slice ----
    for h in range(n_head):                        # static unroll, small head count
        sl = slice(h * hd, (h + 1) * hd)
        qh = qb[:, sl]
        kh = kb[:, sl]
        vh = vb[:, sl]
        s = jnp.dot(qh, kh.T, preferred_element_type=jnp.float32)      # (L, L) f32
        s = s - jnp.max(s, axis=-1, keepdims=True)
        p = jnp.exp(s)
        inv = pl.reciprocal(jnp.sum(p, axis=-1, keepdims=True), approx=True)
        oh = jnp.dot(p.astype(jnp.bfloat16), vh,
                     preferred_element_type=jnp.float32)                # (L, hd) f32
        attn_ref[:, sl] = (oh * inv).astype(jnp.bfloat16)

    # ---- out_proj (single big matmul over the scratch) + residual ----
    proj = jnp.dot(attn_ref[...], wo_ref[...],
                   preferred_element_type=jnp.float32) + bo_ref[...]
    x = x + proj

    # ---- LayerNorm 2 (fp32) + MLP with QuickGELU + residual ----
    mean2 = jnp.mean(x, axis=-1, keepdims=True)
    var2 = jnp.mean((x - mean2) ** 2, axis=-1, keepdims=True)
    ln2 = (x - mean2) * jax.lax.rsqrt(var2 + 1e-5)
    ln2 = ln2 * ln2_w_ref[...] + ln2_b_ref[...]

    h1 = jnp.dot(ln2.astype(jnp.bfloat16), wfc_ref[...],
                 preferred_element_type=jnp.float32) + bfc_ref[...]
    g = h1 * jax.nn.sigmoid(1.702 * h1)            # QuickGELU, f32 elementwise (EUP)
    out = jnp.dot(g.astype(jnp.bfloat16), wproj_ref[...],
                  preferred_element_type=jnp.float32) + bproj_ref[...]

    o_ref[0] = (x + out).astype(o_ref.dtype)       # residual, back to caller dtype


# ------------------------------- wrapper ----------------------------------- #

def residual_attention_block(x, params, n_head):
    """x: (L, N, D).  Returns (L, N, D) in x.dtype."""
    L, N, D = x.shape
    orig_dtype = x.dtype
    # Sequence-first (PyTorch MHA default) -> batch-first so the kernel works on
    # contiguous (L, D) slabs; the layout transform is left to XLA.
    xb = jnp.transpose(x, (1, 0, 2))

    # Advisory cost estimate for the XLA scheduler.
    itemsize = jnp.dtype(orig_dtype).itemsize
    flops = N * L * (24 * D * D + 4 * L * D)
    transcendentals = N * (n_head * L * L + 4 * L * D + 2 * L)
    bytes_accessed = (2 * N * L * D * itemsize     # activations in + out
                      + 12 * D * D * 2             # bf16 weights
                      + 14 * D * 4)                # biases + LN params (f32)

    const = lambda n: (0, 0)                       # weights: fetched once, resident

    out = pl.pallas_call(
        functools.partial(_residual_block_kernel, n_head=n_head),
        out_shape=jax.ShapeDtypeStruct((N, L, D), orig_dtype),
        grid=(N,),
        in_specs=[
            pl.BlockSpec((1, L, D), lambda n: (n, 0, 0)),      # x (one batch row)
            pl.BlockSpec((1, D), const),                       # ln1 weight
            pl.BlockSpec((1, D), const),                       # ln1 bias
            pl.BlockSpec((D, 3 * D), const),                   # in_proj weight^T (bf16)
            pl.BlockSpec((1, 3 * D), const),                   # in_proj bias
            pl.BlockSpec((D, D), const),                       # out_proj weight^T (bf16)
            pl.BlockSpec((1, D), const),                       # out_proj bias
            pl.BlockSpec((1, D), const),                       # ln2 weight
            pl.BlockSpec((1, D), const),                       # ln2 bias
            pl.BlockSpec((D, 4 * D), const),                   # c_fc weight^T (bf16)
            pl.BlockSpec((1, 4 * D), const),                   # c_fc bias
            pl.BlockSpec((4 * D, D), const),                   # c_proj weight^T (bf16)
            pl.BlockSpec((1, D), const),                       # c_proj bias
        ],
        out_specs=pl.BlockSpec((1, L, D), lambda n: (n, 0, 0)),
        scratch_shapes=[pltpu.VMEM((L, D), jnp.bfloat16)],     # head-output slab
        compiler_params=pltpu.CompilerParams(
            dimension_semantics=("parallel",),
            vmem_limit_bytes=48 * 1024 * 1024),
        cost_estimate=pl.CostEstimate(
            flops=flops, transcendentals=transcendentals,
            bytes_accessed=bytes_accessed),
    )(xb,
      params["ln1_w"], params["ln1_b"],
      params["w_qkv"].astype(jnp.bfloat16), params["b_qkv"],
      params["w_o"].astype(jnp.bfloat16), params["b_o"],
      params["ln2_w"], params["ln2_b"],
      params["w_fc"].astype(jnp.bfloat16), params["b_fc"],
      params["w_proj"].astype(jnp.bfloat16), params["b_proj"])

    return jnp.transpose(out, (1, 0, 2))


# ------------------------- deterministic parameters ------------------------ #

def init_params(key, d_model):
    ks = jax.random.split(key, 12)
    s = 0.05
    # PyTorch layouts: in_proj_weight (3D, D), out_proj.weight (D, D),
    # c_fc.weight (4D, D), c_proj.weight (D, 4D).  We store transposes so the
    # kernel computes x @ W directly.
    return {
        "ln1_w": 1.0 + s * jax.random.normal(ks[0], (1, d_model), jnp.float32),
        "ln1_b": s * jax.random.normal(ks[1], (1, d_model), jnp.float32),
        "w_qkv": s * jax.random.normal(ks[2], (d_model, 3 * d_model), jnp.float32),
        "b_qkv": s * jax.random.normal(ks[3], (1, 3 * d_model), jnp.float32),
        "w_o":   s * jax.random.normal(ks[4], (d_model, d_model), jnp.float32),
        "b_o":   s * jax.random.normal(ks[5], (1, d_model), jnp.float32),
        "ln2_w": 1.0 + s * jax.random.normal(ks[6], (1, d_model), jnp.float32),
        "ln2_b": s * jax.random.normal(ks[7], (1, d_model), jnp.float32),
        "w_fc":  s * jax.random.normal(ks[8], (d_model, 4 * d_model), jnp.float32),
        "b_fc":  s * jax.random.normal(ks[9], (1, 4 * d_model), jnp.float32),
        "w_proj": s * jax.random.normal(ks[10], (4 * d_model, d_model), jnp.float32),
        "b_proj": s * jax.random.normal(ks[11], (1, d_model), jnp.float32),
    }


# ------------------------------ JAX reference ------------------------------ #

def reference(x, params, n_head):
    L, N, D = x.shape
    hd = D // n_head

    def ln(v, w, b):
        m = v.mean(-1, keepdims=True)
        va = ((v - m) ** 2).mean(-1, keepdims=True)
        return (v - m) / jnp.sqrt(va + 1e-5) * w + b

    ln1 = ln(x, params["ln1_w"][0], params["ln1_b"][0])
    qkv = ln1 @ params["w_qkv"] + params["b_qkv"][0]
    q, k, v = jnp.split(qkv, 3, axis=-1)

    def split_heads(t):  # (L, N, D) -> (N, H, L, hd)
        return t.reshape(L, N, n_head, hd).transpose(1, 2, 0, 3)

    qh, kh, vh = map(split_heads, (q, k, v))
    s = jnp.einsum("nhld,nhmd->nhlm", qh, kh) / math.sqrt(hd)
    p = jax.nn.softmax(s, axis=-1)
    o = jnp.einsum("nhlm,nhmd->nhld", p, vh)
    o = o.transpose(2, 0, 1, 3).reshape(L, N, D)
    x = x + (o @ params["w_o"] + params["b_o"][0])

    ln2 = ln(x, params["ln2_w"][0], params["ln2_b"][0])
    h = ln2 @ params["w_fc"] + params["b_fc"][0]
    g = h * jax.nn.sigmoid(1.702 * h)
    return x + (g @ params["w_proj"] + params["b_proj"][0])


# ---------------------------------- main ------------------------------------ #

if __name__ == "__main__":
    # TODO(synk): gradient checkpointing / DropPath (dropout>0) are training-only
    # behaviors; dropout=0.0 -> Identity, matching the module defaults.
    L, N, D, H = 8, 2, 32, 4
    key = jax.random.PRNGKey(0)
    kx, kp = jax.random.split(key)
    x = jax.random.normal(kx, (L, N, D), dtype=jnp.float32)
    params = init_params(kp, D)

    y = residual_attention_block(x, params, H)
    y = jax.block_until_ready(y)

    y_ref = reference(x, params, H)
    assert y.shape == (L, N, D)
    # bf16 matmul operands + approx reciprocal -> loosened tolerance vs f32 ref.
    max_err = float(jnp.max(jnp.abs(y - y_ref)))
    assert jnp.allclose(y, y_ref, atol=3e-2, rtol=3e-2), max_err
    print("KERNEL_OK")
</pallas_src>

<mosaic_0001>
module attributes {stable_mosaic.version = 11 : i64} {
  func.func @_residual_block_kernel(%arg0: i32, %arg1: memref<1x8x32xf32, #tpu.memory_space<vmem>>, %arg2: memref<1x32xf32, #tpu.memory_space<vmem>>, %arg3: memref<1x32xf32, #tpu.memory_space<vmem>>, %arg4: memref<32x96xbf16, #tpu.memory_space<vmem>>, %arg5: memref<1x96xf32, #tpu.memory_space<vmem>>, %arg6: memref<32x32xbf16, #tpu.memory_space<vmem>>, %arg7: memref<1x32xf32, #tpu.memory_space<vmem>>, %arg8: memref<1x32xf32, #tpu.memory_space<vmem>>, %arg9: memref<1x32xf32, #tpu.memory_space<vmem>>, %arg10: memref<32x128xbf16, #tpu.memory_space<vmem>>, %arg11: memref<1x128xf32, #tpu.memory_space<vmem>>, %arg12: memref<128x32xbf16, #tpu.memory_space<vmem>>, %arg13: memref<1x32xf32, #tpu.memory_space<vmem>>, %arg14: memref<1x8x32xf32, #tpu.memory_space<vmem>>, %arg15: memref<8x32xbf16, #tpu.memory_space<vmem>>) attributes {dimension_semantics = [#tpu.dimension_semantics<parallel>], iteration_bounds = array<i64: 2>, scalar_prefetch = 0 : i64, scratch_operands = 1 : i64, tpu.core_type = #tpu.core_type<tc>, window_params = [{transform_indices = @transform_0, window_bounds = array<i64: 1, 8, 32>}, {pipeline_mode = #tpu.pipeline_mode<synchronous>, transform_indices = @transform_1, window_bounds = array<i64: 1, 32>}, {pipeline_mode = #tpu.pipeline_mode<synchronous>, transform_indices = @transform_2, window_bounds = array<i64: 1, 32>}, {pipeline_mode = #tpu.pipeline_mode<synchronous>, transform_indices = @transform_3, window_bounds = array<i64: 32, 96>}, {pipeline_mode = #tpu.pipeline_mode<synchronous>, transform_indices = @transform_4, window_bounds = array<i64: 1, 96>}, {pipeline_mode = #tpu.pipeline_mode<synchronous>, transform_indices = @transform_5, window_bounds = array<i64: 32, 32>}, {pipeline_mode = #tpu.pipeline_mode<synchronous>, transform_indices = @transform_6, window_bounds = array<i64: 1, 32>}, {pipeline_mode = #tpu.pipeline_mode<synchronous>, transform_indices = @transform_7, window_bounds = array<i64: 1, 32>}, {pipeline_mode = #tpu.pipeline_mode<synchronous>, transform_indices = @transform_8, window_bounds = array<i64: 1, 32>}, {pipeline_mode = #tpu.pipeline_mode<synchronous>, transform_indices = @transform_9, window_bounds = array<i64: 32, 128>}, {pipeline_mode = #tpu.pipeline_mode<synchronous>, transform_indices = @transform_10, window_bounds = array<i64: 1, 128>}, {pipeline_mode = #tpu.pipeline_mode<synchronous>, transform_indices = @transform_11, window_bounds = array<i64: 128, 32>}, {pipeline_mode = #tpu.pipeline_mode<synchronous>, transform_indices = @transform_12, window_bounds = array<i64: 1, 32>}, {transform_indices = @transform_13, window_bounds = array<i64: 1, 8, 32>}]} {
    %c0 = arith.constant 0 : index
    %c0_0 = arith.constant 0 : index
    %c0_1 = arith.constant 0 : index
    %0 = vector.load %arg1[%c0, %c0_0, %c0_1] : memref<1x8x32xf32, #tpu.memory_space<vmem>>, vector<1x8x32xf32>
    %1 = vector.shape_cast %0 : vector<1x8x32xf32> to vector<8x32xf32>
    %cst = arith.constant dense<0.000000e+00> : vector<8xf32>
    %2 = vector.multi_reduction <add>, %1, %cst [1] : vector<8x32xf32> to vector<8xf32>
    %3 = vector.shape_cast %2 : vector<8xf32> to vector<8x1xf32>
    %cst_2 = arith.constant 3.200000e+01 : f32
    %4 = vector.broadcast %cst_2 : f32 to vector<8x1xf32>
    %5 = arith.divf %3, %4 : vector<8x1xf32>
    %6 = vector.broadcast %5 : vector<8x1xf32> to vector<8x32xf32>
    %7 = arith.subf %1, %6 : vector<8x32xf32>
    %8 = arith.mulf %7, %7 : vector<8x32xf32>
    %cst_3 = arith.constant dense<0.000000e+00> : vector<8xf32>
    %9 = vector.multi_reduction <add>, %8, %cst_3 [1] : vector<8x32xf32> to vector<8xf32>
    %10 = vector.shape_cast %9 : vector<8xf32> to vector<8x1xf32>
    %cst_4 = arith.constant 3.200000e+01 : f32
    %11 = vector.broadcast %cst_4 : f32 to vector<8x1xf32>
    %12 = arith.divf %10, %11 : vector<8x1xf32>
    %13 = vector.broadcast %5 : vector<8x1xf32> to vector<8x32xf32>
    %14 = arith.subf %1, %13 : vector<8x32xf32>
    %cst_5 = arith.constant 9.99999974E-6 : f32
    %15 = vector.broadcast %cst_5 : f32 to vector<8x1xf32>
    %16 = arith.addf %12, %15 : vector<8x1xf32>
    %17 = math.rsqrt %16 : vector<8x1xf32>
    %18 = vector.broadcast %17 : vector<8x1xf32> to vector<8x32xf32>
    %19 = arith.mulf %14, %18 : vector<8x32xf32>
    %c0_6 = arith.constant 0 : index
    %c0_7 = arith.constant 0 : index
    %20 = vector.load %arg2[%c0_6, %c0_7] : memref<1x32xf32, #tpu.memory_space<vmem>>, vector<1x32xf32>
    %21 = vector.broadcast %20 : vector<1x32xf32> to vector<8x32xf32>
    %22 = arith.mulf %19, %21 : vector<8x32xf32>
    %c0_8 = arith.constant 0 : index
    %c0_9 = arith.constant 0 : index
    %23 = vector.load %arg3[%c0_8, %c0_9] : memref<1x32xf32, #tpu.memory_space<vmem>>, vector<1x32xf32>
    %24 = vector.broadcast %23 : vector<1x32xf32> to vector<8x32xf32>
    %25 = arith.addf %22, %24 : vector<8x32xf32>
    %26 = arith.truncf %25 : vector<8x32xf32> to vector<8x32xbf16>
    %c0_10 = arith.constant 0 : index
    %c0_11 = arith.constant 0 : index
    %27 = vector.load %arg4[%c0_10, %c0_11] : memref<32x96xbf16, #tpu.memory_space<vmem>>, vector<32x96xbf16>
    %cst_12 = arith.constant dense<0.000000e+00> : vector<8x96xf32>
    %28 = tpu.matmul %26, %27, %cst_12 {dimension_numbers = #tpu.dot_dimension_numbers<[1], [0], [0], [1], [0, 0, 1, 1], [], []>} : vector<8x32xbf16>, vector<32x96xbf16>, vector<8x96xf32> -> vector<8x96xf32>
    %c0_13 = arith.constant 0 : index
    %c0_14 = arith.constant 0 : index
    %29 = vector.load %arg5[%c0_13, %c0_14] : memref<1x96xf32, #tpu.memory_space<vmem>>, vector<1x96xf32>
    %30 = vector.broadcast %29 : vector<1x96xf32> to vector<8x96xf32>
    %31 = arith.addf %28, %30 : vector<8x96xf32>
    %32 = vector.extract_strided_slice %31 {offsets = [0, 0], sizes = [8, 32], strides = [1, 1]} : vector<8x96xf32> to vector<8x32xf32>
    %cst_15 = arith.constant 0.353553385 : f32
    %33 = vector.broadcast %cst_15 : f32 to vector<8x32xf32>
    %34 = arith.mulf %32, %33 : vector<8x32xf32>
    %35 = arith.truncf %34 : vector<8x32xf32> to vector<8x32xbf16>
    %36 = vector.extract_strided_slice %31 {offsets = [0, 32], sizes = [8, 32], strides = [1, 1]} : vector<8x96xf32> to vector<8x32xf32>
    %37 = arith.truncf %36 : vector<8x32xf32> to vector<8x32xbf16>
    %38 = vector.extract_strided_slice %31 {offsets = [0, 64], sizes = [8, 32], strides = [1, 1]} : vector<8x96xf32> to vector<8x32xf32>
    %39 = arith.truncf %38 : vector<8x32xf32> to vector<8x32xbf16>
    %40 = vector.extract_strided_slice %35 {offsets = [0, 0], sizes = [8, 8], strides = [1, 1]} : vector<8x32xbf16> to vector<8x8xbf16>
    %41 = vector.extract_strided_slice %37 {offsets = [0, 0], sizes = [8, 8], strides = [1, 1]} : vector<8x32xbf16> to vector<8x8xbf16>
    %42 = vector.extract_strided_slice %39 {offsets = [0, 0], sizes = [8, 8], strides = [1, 1]} : vector<8x32xbf16> to vector<8x8xbf16>
    %43 = tpu.transpose %41, [1, 0] : vector<8x8xbf16> -> vector<8x8xbf16>
    %cst_16 = arith.constant dense<0.000000e+00> : vector<8x8xf32>
    %44 = tpu.matmul %40, %43, %cst_16 {dimension_numbers = #tpu.dot_dimension_numbers<[1], [0], [0], [1], [0, 0, 1, 1], [], []>} : vector<8x8xbf16>, vector<8x8xbf16>, vector<8x8xf32> -> vector<8x8xf32>
    %cst_17 = arith.constant dense<0xFF800000> : vector<8xf32>
    %45 = vector.multi_reduction <maximumf>, %44, %cst_17 [1] : vector<8x8xf32> to vector<8xf32>
    %46 = vector.shape_cast %45 : vector<8xf32> to vector<8x1xf32>
    %47 = vector.broadcast %46 : vector<8x1xf32> to vector<8x8xf32>
    %48 = arith.subf %44, %47 : vector<8x8xf32>
    %49 = math.exp %48 : vector<8x8xf32>
    %cst_18 = arith.constant dense<0.000000e+00> : vector<8xf32>
    %50 = vector.multi_reduction <add>, %49, %cst_18 [1] : vector<8x8xf32> to vector<8xf32>
    %51 = vector.shape_cast %50 : vector<8xf32> to vector<8x1xf32>
    %52 = tpu.reciprocal %51 {approx = true} : vector<8x1xf32> -> vector<8x1xf32>
    %53 = arith.truncf %49 : vector<8x8xf32> to vector<8x8xbf16>
    %cst_19 = arith.constant dense<0.000000e+00> : vector<8x8xf32>
    %54 = tpu.matmul %53, %42, %cst_19 {dimension_numbers = #tpu.dot_dimension_numbers<[1], [0], [0], [1], [0, 0, 1, 1], [], []>} : vector<8x8xbf16>, vector<8x8xbf16>, vector<8x8xf32> -> vector<8x8xf32>
    %55 = vector.broadcast %52 : vector<8x1xf32> to vector<8x8xf32>
    %56 = arith.mulf %54, %55 : vector<8x8xf32>
    %57 = arith.truncf %56 : vector<8x8xf32> to vector<8x8xbf16>
    %c0_20 = arith.constant 0 : index
    %c0_21 = arith.constant 0 : index
    %58 = vector.load %arg15[%c0_20, %c0_21] : memref<8x32xbf16, #tpu.memory_space<vmem>>, vector<8x8xbf16>
    tpu.vector_store %arg15[%c0_20, %c0_21], %57 {strides = array<i32>} : memref<8x32xbf16, #tpu.memory_space<vmem>>, vector<8x8xbf16>,
    %59 = vector.extract_strided_slice %35 {offsets = [0, 8], sizes = [8, 8], strides = [1, 1]} : vector<8x32xbf16> to vector<8x8xbf16>
    %60 = vector.extract_strided_slice %37 {offsets = [0, 8], sizes = [8, 8], strides = [1, 1]} : vector<8x32xbf16> to vector<8x8xbf16>
    %61 = vector.extract_strided_slice %39 {offsets = [0, 8], sizes = [8, 8], strides = [1, 1]} : vector<8x32xbf16> to vector<8x8xbf16>
    %62 = tpu.transpose %60, [1, 0] : vector<8x8xbf16> -> vector<8x8xbf16>
    %cst_22 = arith.constant dense<0.000000e+00> : vector<8x8xf32>
    %63 = tpu.matmul %59, %62, %cst_22 {dimension_numbers = #tpu.dot_dimension_numbers<[1], [0], [0], [1], [0, 0, 1, 1], [], []>} : vector<8x8xbf16>, vector<8x8xbf16>, vector<8x8xf32> -> vector<8x8xf32>
    %cst_23 = arith.constant dense<0xFF800000> : vector<8xf32>
    %64 = vector.multi_reduction <maximumf>, %63, %cst_23 [1] : vector<8x8xf32> to vector<8xf32>
    %65 = vector.shape_cast %64 : vector<8xf32> to vector<8x1xf32>
    %66 = vector.broadcast %65 : vector<8x1xf32> to vector<8x8xf32>
    %67 = arith.subf %63, %66 : vector<8x8xf32>
    %68 = math.exp %67 : vector<8x8xf32>
    %cst_24 = arith.constant dense<0.000000e+00> : vector<8xf32>
    %69 = vector.multi_reduction <add>, %68, %cst_24 [1] : vector<8x8xf32> to vector<8xf32>
    %70 = vector.shape_cast %69 : vector<8xf32> to vector<8x1xf32>
    %71 = tpu.reciprocal %70 {approx = true} : vector<8x1xf32> -> vector<8x1xf32>
    %72 = arith.truncf %68 : vector<8x8xf32> to vector<8x8xbf16>
    %cst_25 = arith.constant dense<0.000000e+00> : vector<8x8xf32>
    %73 = tpu.matmul %72, %61, %cst_25 {dimension_numbers = #tpu.dot_dimension_numbers<[1], [0], [0], [1], [0, 0, 1, 1], [], []>} : vector<8x8xbf16>, vector<8x8xbf16>, vector<8x8xf32> -> vector<8x8xf32>
    %74 = vector.broadcast %71 : vector<8x1xf32> to vector<8x8xf32>
    %75 = arith.mulf %73, %74 : vector<8x8xf32>
    %76 = arith.truncf %75 : vector<8x8xf32> to vector<8x8xbf16>
    %c0_26 = arith.constant 0 : index
    %c8 = arith.constant 8 : index
    %77 = vector.load %arg15[%c0_26, %c8] : memref<8x32xbf16, #tpu.memory_space<vmem>>, vector<8x8xbf16>
    tpu.vector_store %arg15[%c0_26, %c8], %76 {strides = array<i32>} : memref<8x32xbf16, #tpu.memory_space<vmem>>, vector<8x8xbf16>,
    %78 = vector.extract_strided_slice %35 {offsets = [0, 16], sizes = [8, 8], strides = [1, 1]} : vector<8x32xbf16> to vector<8x8xbf16>
    %79 = vector.extract_strided_slice %37 {offsets = [0, 16], sizes = [8, 8], strides = [1, 1]} : vector<8x32xbf16> to vector<8x8xbf16>
    %80 = vector.extract_strided_slice %39 {offsets = [0, 16], sizes = [8, 8], strides = [1, 1]} : vector<8x32xbf16> to vector<8x8xbf16>
    %81 = tpu.transpose %79, [1, 0] : vector<8x8xbf16> -> vector<8x8xbf16>
    %cst_27 = arith.constant dense<0.000000e+00> : vector<8x8xf32>
    %82 = tpu.matmul %78, %81, %cst_27 {dimension_numbers = #tpu.dot_dimension_numbers<[1], [0], [0], [1], [0, 0, 1, 1], [], []>} : vector<8x8xbf16>, vector<8x8xbf16>, vector<8x8xf32> -> vector<8x8xf32>
    %cst_28 = arith.constant dense<0xFF800000> : vector<8xf32>
    %83 = vector.multi_reduction <maximumf>, %82, %cst_28 [1] : vector<8x8xf32> to vector<8xf32>
    %84 = vector.shape_cast %83 : vector<8xf32> to vector<8x1xf32>
    %85 = vector.broadcast %84 : vector<8x1xf32> to vector<8x8xf32>
    %86 = arith.subf %82, %85 : vector<8x8xf32>
    %87 = math.exp %86 : vector<8x8xf32>
    %cst_29 = arith.constant dense<0.000000e+00> : vector<8xf32>
    %88 = vector.multi_reduction <add>, %87, %cst_29 [1] : vector<8x8xf32> to vector<8xf32>
    %89 = vector.shape_cast %88 : vector<8xf32> to vector<8x1xf32>
    %90 = tpu.reciprocal %89 {approx = true} : vector<8x1xf32> -> vector<8x1xf32>
    %91 = arith.truncf %87 : vector<8x8xf32> to vector<8x8xbf16>
    %cst_30 = arith.constant dense<0.000000e+00> : vector<8x8xf32>
    %92 = tpu.matmul %91, %80, %cst_30 {dimension_numbers = #tpu.dot_dimension_numbers<[1], [0], [0], [1], [0, 0, 1, 1], [], []>} : vector<8x8xbf16>, vector<8x8xbf16>, vector<8x8xf32> -> vector<8x8xf32>
    %93 = vector.broadcast %90 : vector<8x1xf32> to vector<8x8xf32>
    %94 = arith.mulf %92, %93 : vector<8x8xf32>
    %95 = arith.truncf %94 : vector<8x8xf32> to vector<8x8xbf16>
    %c0_31 = arith.constant 0 : index
    %c16 = arith.constant 16 : index
    %96 = vector.load %arg15[%c0_31, %c16] : memref<8x32xbf16, #tpu.memory_space<vmem>>, vector<8x8xbf16>
    tpu.vector_store %arg15[%c0_31, %c16], %95 {strides = array<i32>} : memref<8x32xbf16, #tpu.memory_space<vmem>>, vector<8x8xbf16>,
    %97 = vector.extract_strided_slice %35 {offsets = [0, 24], sizes = [8, 8], strides = [1, 1]} : vector<8x32xbf16> to vector<8x8xbf16>
    %98 = vector.extract_strided_slice %37 {offsets = [0, 24], sizes = [8, 8], strides = [1, 1]} : vector<8x32xbf16> to vector<8x8xbf16>
    %99 = vector.extract_strided_slice %39 {offsets = [0, 24], sizes = [8, 8], strides = [1, 1]} : vector<8x32xbf16> to vector<8x8xbf16>
    %100 = tpu.transpose %98, [1, 0] : vector<8x8xbf16> -> vector<8x8xbf16>
    %cst_32 = arith.constant dense<0.000000e+00> : vector<8x8xf32>
    %101 = tpu.matmul %97, %100, %cst_32 {dimension_numbers = #tpu.dot_dimension_numbers<[1], [0], [0], [1], [0, 0, 1, 1], [], []>} : vector<8x8xbf16>, vector<8x8xbf16>, vector<8x8xf32> -> vector<8x8xf32>
    %cst_33 = arith.constant dense<0xFF800000> : vector<8xf32>
    %102 = vector.multi_reduction <maximumf>, %101, %cst_33 [1] : vector<8x8xf32> to vector<8xf32>
    %103 = vector.shape_cast %102 : vector<8xf32> to vector<8x1xf32>
    %104 = vector.broadcast %103 : vector<8x1xf32> to vector<8x8xf32>
    %105 = arith.subf %101, %104 : vector<8x8xf32>
    %106 = math.exp %105 : vector<8x8xf32>
    %cst_34 = arith.constant dense<0.000000e+00> : vector<8xf32>
    %107 = vector.multi_reduction <add>, %106, %cst_34 [1] : vector<8x8xf32> to vector<8xf32>
    %108 = vector.shape_cast %107 : vector<8xf32> to vector<8x1xf32>
    %109 = tpu.reciprocal %108 {approx = true} : vector<8x1xf32> -> vector<8x1xf32>
    %110 = arith.truncf %106 : vector<8x8xf32> to vector<8x8xbf16>
    %cst_35 = arith.constant dense<0.000000e+00> : vector<8x8xf32>
    %111 = tpu.matmul %110, %99, %cst_35 {dimension_numbers = #tpu.dot_dimension_numbers<[1], [0], [0], [1], [0, 0, 1, 1], [], []>} : vector<8x8xbf16>, vector<8x8xbf16>, vector<8x8xf32> -> vector<8x8xf32>
    %112 = vector.broadcast %109 : vector<8x1xf32> to vector<8x8xf32>
    %113 = arith.mulf %111, %112 : vector<8x8xf32>
    %114 = arith.truncf %113 : vector<8x8xf32> to vector<8x8xbf16>
    %c0_36 = arith.constant 0 : index
    %c24 = arith.constant 24 : index
    %115 = vector.load %arg15[%c0_36, %c24] : memref<8x32xbf16, #tpu.memory_space<vmem>>, vector<8x8xbf16>
    tpu.vector_store %arg15[%c0_36, %c24], %114 {strides = array<i32>} : memref<8x32xbf16, #tpu.memory_space<vmem>>, vector<8x8xbf16>,
    %c0_37 = arith.constant 0 : index
    %c0_38 = arith.constant 0 : index
    %116 = vector.load %arg15[%c0_37, %c0_38] : memref<8x32xbf16, #tpu.memory_space<vmem>>, vector<8x32xbf16>
    %c0_39 = arith.constant 0 : index
    %c0_40 = arith.constant 0 : index
    %117 = vector.load %arg6[%c0_39, %c0_40] : memref<32x32xbf16, #tpu.memory_space<vmem>>, vector<32x32xbf16>
    %cst_41 = arith.constant dense<0.000000e+00> : vector<8x32xf32>
    %118 = tpu.matmul %116, %117, %cst_41 {dimension_numbers = #tpu.dot_dimension_numbers<[1], [0], [0], [1], [0, 0, 1, 1], [], []>} : vector<8x32xbf16>, vector<32x32xbf16>, vector<8x32xf32> -> vector<8x32xf32>
    %c0_42 = arith.constant 0 : index
    %c0_43 = arith.constant 0 : index
    %119 = vector.load %arg7[%c0_42, %c0_43] : memref<1x32xf32, #tpu.memory_space<vmem>>, vector<1x32xf32>
    %120 = vector.broadcast %119 : vector<1x32xf32> to vector<8x32xf32>
    %121 = arith.addf %118, %120 : vector<8x32xf32>
    %122 = arith.addf %1, %121 : vector<8x32xf32>
    %cst_44 = arith.constant dense<0.000000e+00> : vector<8xf32>
    %123 = vector.multi_reduction <add>, %122, %cst_44 [1] : vector<8x32xf32> to vector<8xf32>
    %124 = vector.shape_cast %123 : vector<8xf32> to vector<8x1xf32>
    %cst_45 = arith.constant 3.200000e+01 : f32
    %125 = vector.broadcast %cst_45 : f32 to vector<8x1xf32>
    %126 = arith.divf %124, %125 : vector<8x1xf32>
    %127 = vector.broadcast %126 : vector<8x1xf32> to vector<8x32xf32>
    %128 = arith.subf %122, %127 : vector<8x32xf32>
    %129 = arith.mulf %128, %128 : vector<8x32xf32>
    %cst_46 = arith.constant dense<0.000000e+00> : vector<8xf32>
    %130 = vector.multi_reduction <add>, %129, %cst_46 [1] : vector<8x32xf32> to vector<8xf32>
    %131 = vector.shape_cast %130 : vector<8xf32> to vector<8x1xf32>
    %cst_47 = arith.constant 3.200000e+01 : f32
    %132 = vector.broadcast %cst_47 : f32 to vector<8x1xf32>
    %133 = arith.divf %131, %132 : vector<8x1xf32>
    %134 = vector.broadcast %126 : vector<8x1xf32> to vector<8x32xf32>
    %135 = arith.subf %122, %134 : vector<8x32xf32>
    %cst_48 = arith.constant 9.99999974E-6 : f32
    %136 = vector.broadcast %cst_48 : f32 to vector<8x1xf32>
    %137 = arith.addf %133, %136 : vector<8x1xf32>
    %138 = math.rsqrt %137 : vector<8x1xf32>
    %139 = vector.broadcast %138 : vector<8x1xf32> to vector<8x32xf32>
    %140 = arith.mulf %135, %139 : vector<8x32xf32>
    %c0_49 = arith.constant 0 : index
    %c0_50 = arith.constant 0 : index
    %141 = vector.load %arg8[%c0_49, %c0_50] : memref<1x32xf32, #tpu.memory_space<vmem>>, vector<1x32xf32>
    %142 = vector.broadcast %141 : vector<1x32xf32> to vector<8x32xf32>
    %143 = arith.mulf %140, %142 : vector<8x32xf32>
    %c0_51 = arith.constant 0 : index
    %c0_52 = arith.constant 0 : index
    %144 = vector.load %arg9[%c0_51, %c0_52] : memref<1x32xf32, #tpu.memory_space<vmem>>, vector<1x32xf32>
    %145 = vector.broadcast %144 : vector<1x32xf32> to vector<8x32xf32>
    %146 = arith.addf %143, %145 : vector<8x32xf32>
    %147 = arith.truncf %146 : vector<8x32xf32> to vector<8x32xbf16>
    %c0_53 = arith.constant 0 : index
    %c0_54 = arith.constant 0 : index
    %148 = vector.load %arg10[%c0_53, %c0_54] : memref<32x128xbf16, #tpu.memory_space<vmem>>, vector<32x128xbf16>
    %cst_55 = arith.constant dense<0.000000e+00> : vector<8x128xf32>
    %149 = tpu.matmul %147, %148, %cst_55 {dimension_numbers = #tpu.dot_dimension_numbers<[1], [0], [0], [1], [0, 0, 1, 1], [], []>} : vector<8x32xbf16>, vector<32x128xbf16>, vector<8x128xf32> -> vector<8x128xf32>
    %c0_56 = arith.constant 0 : index
    %c0_57 = arith.constant 0 : index
    %150 = vector.load %arg11[%c0_56, %c0_57] : memref<1x128xf32, #tpu.memory_space<vmem>>, vector<1x128xf32>
    %151 = vector.broadcast %150 : vector<1x128xf32> to vector<8x128xf32>
    %152 = arith.addf %149, %151 : vector<8x128xf32>
    %cst_58 = arith.constant 1.702000e+00 : f32
    %153 = vector.broadcast %cst_58 : f32 to vector<8x128xf32>
    %154 = arith.mulf %153, %152 : vector<8x128xf32>
    %155 = arith.negf %154 : vector<8x128xf32>
    %156 = math.exp %155 : vector<8x128xf32>
    %cst_59 = arith.constant 1.000000e+00 : f32
    %157 = vector.broadcast %cst_59 : f32 to vector<8x128xf32>
    %158 = arith.addf %157, %156 : vector<8x128xf32>
    %159 = arith.divf %157, %158 : vector<8x128xf32>
    %160 = arith.mulf %152, %159 : vector<8x128xf32>
    %161 = arith.truncf %160 : vector<8x128xf32> to vector<8x128xbf16>
    %c0_60 = arith.constant 0 : index
    %c0_61 = arith.constant 0 : index
    %162 = vector.load %arg12[%c0_60, %c0_61] : memref<128x32xbf16, #tpu.memory_space<vmem>>, vector<128x32xbf16>
    %cst_62 = arith.constant dense<0.000000e+00> : vector<8x32xf32>
    %163 = tpu.matmul %161, %162, %cst_62 {dimension_numbers = #tpu.dot_dimension_numbers<[1], [0], [0], [1], [0, 0, 1, 1], [], []>} : vector<8x128xbf16>, vector<128x32xbf16>, vector<8x32xf32> -> vector<8x32xf32>
    %c0_63 = arith.constant 0 : index
    %c0_64 = arith.constant 0 : index
    %164 = vector.load %arg13[%c0_63, %c0_64] : memref<1x32xf32, #tpu.memory_space<vmem>>, vector<1x32xf32>
    %165 = vector.broadcast %164 : vector<1x32xf32> to vector<8x32xf32>
    %166 = arith.addf %163, %165 : vector<8x32xf32>
    %167 = arith.addf %122, %166 : vector<8x32xf32>
    %c0_65 = arith.constant 0 : index
    %c0_66 = arith.constant 0 : index
    %c0_67 = arith.constant 0 : index
    %168 = vector.load %arg14[%c0_65, %c0_66, %c0_67] : memref<1x8x32xf32, #tpu.memory_space<vmem>>, vector<1x8x32xf32>
    %169 = vector.shape_cast %168 : vector<1x8x32xf32> to vector<8x32xf32>
    %170 = vector.shape_cast %167 : vector<8x32xf32> to vector<1x8x32xf32>
    tpu.vector_store %arg14[%c0_65, %c0_66, %c0_67], %170 {strides = array<i32>} : memref<1x8x32xf32, #tpu.memory_space<vmem>>, vector<1x8x32xf32>,
    return
  }
  func.func @transform_0(%arg0: i32) -> (i32, i32, i32) {
    %c0_i32 = arith.constant 0 : i32
    %c0_i32_0 = arith.constant 0 : i32
    %c0_i32_1 = arith.constant 0 : i32
    return %arg0, %c0_i32, %c0_i32_0 : i32, i32, i32
  }
  func.func @transform_1(%arg0: i32) -> (i32, i32) {
    %c0_i32 = arith.constant 0 : i32
    %c0_i32_0 = arith.constant 0 : i32
    %c0_i32_1 = arith.constant 0 : i32
    return %c0_i32, %c0_i32_0 : i32, i32
  }
  func.func @transform_2(%arg0: i32) -> (i32, i32) {
    %c0_i32 = arith.constant 0 : i32
    %c0_i32_0 = arith.constant 0 : i32
    %c0_i32_1 = arith.constant 0 : i32
    return %c0_i32, %c0_i32_0 : i32, i32
  }
  func.func @transform_3(%arg0: i32) -> (i32, i32) {
    %c0_i32 = arith.constant 0 : i32
    %c0_i32_0 = arith.constant 0 : i32
    %c0_i32_1 = arith.constant 0 : i32
    return %c0_i32, %c0_i32_0 : i32, i32
  }
  func.func @transform_4(%arg0: i32) -> (i32, i32) {
    %c0_i32 = arith.constant 0 : i32
    %c0_i32_0 = arith.constant 0 : i32
    %c0_i32_1 = arith.constant 0 : i32
    return %c0_i32, %c0_i32_0 : i32, i32
  }
  func.func @transform_5(%arg0: i32) -> (i32, i32) {
    %c0_i32 = arith.constant 0 : i32
    %c0_i32_0 = arith.constant 0 : i32
    %c0_i32_1 = arith.constant 0 : i32
    return %c0_i32, %c0_i32_0 : i32, i32
  }
  func.func @transform_6(%arg0: i32) -> (i32, i32) {
    %c0_i32 = arith.constant 0 : i32
    %c0_i32_0 = arith.constant 0 : i32
    %c0_i32_1 = arith.constant 0 : i32
    return %c0_i32, %c0_i32_0 : i32, i32
  }
  func.func @transform_7(%arg0: i32) -> (i32, i32) {
    %c0_i32 = arith.constant 0 : i32
    %c0_i32_0 = arith.constant 0 : i32
    %c0_i32_1 = arith.constant 0 : i32
    return %c0_i32, %c0_i32_0 : i32, i32
  }
  func.func @transform_8(%arg0: i32) -> (i32, i32) {
    %c0_i32 = arith.constant 0 : i32
    %c0_i32_0 = arith.constant 0 : i32
    %c0_i32_1 = arith.constant 0 : i32
    return %c0_i32, %c0_i32_0 : i32, i32
  }
  func.func @transform_9(%arg0: i32) -> (i32, i32) {
    %c0_i32 = arith.constant 0 : i32
    %c0_i32_0 = arith.constant 0 : i32
    %c0_i32_1 = arith.constant 0 : i32
    return %c0_i32, %c0_i32_0 : i32, i32
  }
  func.func @transform_10(%arg0: i32) -> (i32, i32) {
    %c0_i32 = arith.constant 0 : i32
    %c0_i32_0 = arith.constant 0 : i32
    %c0_i32_1 = arith.constant 0 : i32
    return %c0_i32, %c0_i32_0 : i32, i32
  }
  func.func @transform_11(%arg0: i32) -> (i32, i32) {
    %c0_i32 = arith.constant 0 : i32
    %c0_i32_0 = arith.constant 0 : i32
    %c0_i32_1 = arith.constant 0 : i32
    return %c0_i32, %c0_i32_0 : i32, i32
  }
  func.func @transform_12(%arg0: i32) -> (i32, i32) {
    %c0_i32 = arith.constant 0 : i32
    %c0_i32_0 = arith.constant 0 : i32
    %c0_i32_1 = arith.constant 0 : i32
    return %c0_i32, %c0_i32_0 : i32, i32
  }
  func.func @transform_13(%arg0: i32) -> (i32, i32, i32) {
    %c0_i32 = arith.constant 0 : i32
    %c0_i32_0 = arith.constant 0 : i32
    %c0_i32_1 = arith.constant 0 : i32
    return %arg0, %c0_i32, %c0_i32_0 : i32, i32, i32
  }
}

</mosaic_0001>

<bundles_post_ra>
// kernel: tpu_custom_call.1
= control target key start
LH: loop header
LB: loop body
LE: loop exit
PB: predicated region body
PF: predicated region fallthrough
CT: control target
= control target key end

     0   :  { %s2051_s0 = inlined_call_operand.vmem [shape: f32[2,8,32], index: 0, kind: input, shape index: {}]   ;;  %s2052_s1 = inlined_call_operand.vmem [shape: f32[1,32], index: 1, kind: input, shape index: {}]   ;;  %s2053_s2 = inlined_call_operand.vmem [shape: f32[1,32], index: 2, kind: input, shape index: {}]   ;;  %s2054_s3 = inlined_call_operand.vmem [shape: bf16[32,96], index: 3, kind: input, shape index: {}]   ;;  %s2055_s4 = inlined_call_operand.vmem [shape: f32[1,96], index: 4, kind: input, shape index: {}]   ;;  %s2056_s5 = inlined_call_operand.vmem [shape: bf16[32,32], index: 5, kind: input, shape index: {}]   ;;  %s2057_s6 = inlined_call_operand.vmem [shape: f32[1,32], index: 6, kind: input, shape index: {}]   ;;  %s2058_s7 = inlined_call_operand.vmem [shape: f32[1,32], index: 7, kind: input, shape index: {}]   ;;  %s2059_s8 = inlined_call_operand.vmem [shape: f32[1,32], index: 8, kind: input, shape index: {}]   ;;  %s2060_s9 = inlined_call_operand.vmem [shape: bf16[32,128], index: 9, kind: input, shape index: {}]   ;;  %s2061_s10 = inlined_call_operand.vmem [shape: f32[1,128], index: 10, kind: input, shape index: {}]   ;;  %s2062_s11 = inlined_call_operand.vmem [shape: bf16[128,32], index: 11, kind: input, shape index: {}]   ;;  %s2063_s12 = inlined_call_operand.vmem [shape: f32[1,32], index: 12, kind: input, shape index: {}]   ;;  %s2064_s13 = inlined_call_operand.hbm [shape: f32[2,8,32], index: 13, kind: output, shape index: {}]  }
   0x1   :  { %2065 = sst [smem:[#allocation6_spill]] %s2051_s0 }
   0x2   :  { %2066 = sst [smem:[#allocation7_spill]] %s2052_s1 }
   0x3   :  { %2067 = sst [smem:[#allocation8_spill]] %s2053_s2 }
   0x4   :  { %18 = vsyncpa [#allocation4], 0 }
   0x5   :  { %20 = vsyncpa [#allocation4 + $0x1], 0  ;;  %s1788_s25 = smov 0   ;;  %s1790_s26 = smov 0  }
   0x6   :  { %s1792_s27 = smov 0   ;;  %s1794_s28 = smov 0  }
   0x7 LB: > { %s1809_s29 = sadd.s32 4294967295, %s1699_s28   ;;  %s1370_s30 = sadd.s32 4294967294, %s1699_s28   ;;  %s1699_s28 = sphi %s1794_s28, %s2076_s28   ;;  %s1695_s27 = sphi %s1792_s27, %s2075_s27   ;;  %s1691_s26 = sphi %s1790_s26, %s2074_s26   ;;  %s1687_s25 = sphi %s1788_s25, %s2073_s25  }
   0x8   : > { %s1813_s14 = sadd.s32 1, %s1699_s28   ;;  %s311_s15 = sadd.s32 1, %s1695_s27 }
   0x9   : > { %s308_s16 = ssub.s32 %s1699_s28, %s1813_s14  ;;  %p321_p0 = scmp.ne.s32.totalorder %s1695_s27, %s1691_s26 }
   0xa   : > { %p309_p1 = scmp.eq.s32.totalorder %s308_s16, 0  ;;  %p322_p2 = scmp.eq.s32.totalorder %s1809_s29, 1 }
   0xb   : > { %p327_p3 = scmp.ne.s32.totalorder %s1691_s26, %s1687_s25  ;;  %p328_p4 = scmp.eq.s32.totalorder %s1370_s30, 1 }
   0xc   : > { %s1824_s17 = scalar_select %p309_p1, %s1695_s27, %s311_s15  }
   0xd   : > { %p1826_p5 = por %p322_p2, %p321_p0  ;;  %p1830_p6 = por %p328_p4, %p327_p3 }
   0xe   : > { %p1373_p7 = scmp.ge.s32.totalorder %s1699_s28, 1  ;;  %p389_p8 = scmp.lt.s32.totalorder %s1699_s28, 3 }
  0x10   : > { %p390_p9 = pnand %p1373_p7, %p389_p8 }
  0x11   : > { %p432_p10 = scmp.lt.s32.totalorder (!%p390_p9), %s1809_s29, 1  ;;  %s2070_s0 = sld [smem:[#allocation6_spill]] (!%p390_p9) }
  0x12   : > { %393 = sbr.rel (%p390_p9) target bundleno = 2342 (0x926), region = 72  ;;  %s2071_s1 = sld [smem:[#allocation7_spill]] (!%p390_p9) }
  0x13   : > { %s2072_s2 = sld [smem:[#allocation8_spill]] (!%p390_p9)  ;;  %s1703_s16 = smov (!%p390_p9), 96  }
  0x14   : > { %s1706_s22 = smov (!%p390_p9), 80   ;;  %s1707_s23 = smov (!%p390_p9), 112  }
  0x15   : > { %s1709_s30 = smov (!%p390_p9), 104   ;;  %s1710_s15 = smov (!%p390_p9), 64  }
  0x17   : > { %s433_s20 = scalar_select %p432_p10, %s1809_s29, 1  ;;  %vm438_vm0 = vcmask 261120   ;;  %v1601_v7 = vld [vmem:[%s2054_s3 + $0x8] sm:$0xff]   ;;  %v1701_v8 = vmov 0.0   ;;  %vm1702_vm1 = vmmov 0   ;;  %v1602_v9 = vld [vmem:[%s2054_s3] sm:$0xff]  }
  0x18   : > { %1454 = vmatprep.subr.bf16.mxu0 %v1701_v8  ;;  %1458 = vmatprep.mubr.msk.bf16.mxu0 %vm1702_vm1, %v1701_v8  ;;  %v1376_v14 = vld [vmem:[%s2071_s1] ss:$0 sm:$0xff]  ;;  %vm542_vm2 = vcmask 64512   ;;  %vm605_vm3 = vcmask 1043456   ;;  %vm651_vm4 = vcmask 60416   ;;  %vm771_vm5 = vcmask 126016  }
  0x19   : > { %s1375_s21 = sshll.u32 %s433_s20, 3  ;;  %1455 = vmatpush3.bf16.msra.mxu0 %v1601_v7  ;;  %1474 = vmatprep.subr.bf16.mxu1 %v1701_v8  ;;  %v1377_v16 = vld [vmem:[%s2072_s2] ss:$0 sm:$0xff]  ;;  %s1704_s20 = smov 120   ;;  %vm890_vm6 = vcmask 191616   ;;  %vm1009_vm7 = vcmask 257216  }
  0x1a   : > { %s435_s24 = scalar_lea.vmem %s2070_s0, %s1375_s21  ;;  %1456 = vmatprep.subr.bf16.mxu0 %v1701_v8  ;;  %1476 = vmatprep.mubr.msk.bf16.mxu1 %vm1702_vm1, %v1701_v8  ;;  %v1378_v20 = vld [vmem:[%s2055_s4] ss:$0 sm:$0xff]  ;;  %s1705_s21 = smov 88  }
  0x1b   : > { %v1841_v0 = vld [vmem:[%s435_s24] sm:$0xff]  ;;  %s1708_s24 = smov 72  }
  0x1c   : > { %v439_v1 = vsel %vm438_vm0, %v1841_v0, 0.0 }
  0x1d   : > { %440 = vadd.xlane.f32.xlu0 %v439_v1  ;;  %1457 = vmatpush3.bf16.msra.mxu0 %v1602_v9 }
  0x1e   : > { %1462 = vmatprep.subr.bf16.mxu0 %v1701_v8 }
  0xa6   : > { %v441_v2 = vpop.xlane.xlu0 %440 }
  0xa7   : > { %v443_v3 = vmul.f32 0.03125, %v441_v2 }
  0xa9   : > { %v444_v4 = vsub.f32 %v1841_v0, %v443_v3 }
  0xab   : > { %v445_v5 = vmul.f32 %v444_v4, %v444_v4 }
  0xad   : > { %v446_v6 = vsel %vm438_vm0, %v445_v5, 0.0 }
  0xae   : > { %447 = vadd.xlane.f32.xlu0 %v446_v6 }
 0x137   : > { %v448_v10 = vpop.xlane.xlu0 %447 }
 0x138   : > { %v449_v11 = vmul.f32 0.03125, %v448_v10 }
 0x13a   : > { %v450_v12 = vadd.f32 1e-05, %v449_v11 }
 0x13c   : > { %1615 = vrsqrt.f32 %v450_v12 }
 0x149   : > { %v1616_v13 = vpop.eup %1615 }
 0x14a   : > { %v452_v15 = vmul.f32 %v1616_v13, %v444_v4 }
 0x14c   : > { %v460_v17 = vmul.f32 %v1376_v14, %v452_v15 }
 0x14e   : > { %v468_v18 = vadd.f32 %v1377_v16, %v460_v17 }
 0x150   : > { %v469_v19 = vpack.c.bf16 %v468_v18, %v468_v18 }
 0x152   : > { %1459 = vmatmul.mubr.msk.bf16.vlgmr.msra.gmra.mxu0 %vm438_vm0, %v469_v19 }
 0x153   : > { %1464 = vmatprep.mubr.msk.bf16.mxu0 %vm1702_vm1, %v1701_v8 }
 0x212   : > { %v530_v21 = vpop.f32.mrf.mxu0 }
 0x213   : > { %v531_v22 = vadd.f32 %v1378_v20, %v530_v21 }
 0x214   : > { %v1460_v23 = vpop.f32.mrf.mxu0 }
 0x215   : > { %v536_v24 = vmul.f32 0.35355338, %v531_v22  ;;  %v1873_v25 = vpack.c.bf16 %v531_v22, %v531_v22 }
 0x216   : > { %v533_v26 = vpop.f32.mrf.mxu0 }
 0x217   : > { %v537_v27 = vpack.c.bf16 %v536_v24, %v536_v24  ;;  %540 = vrot.lane.b32.xlu1 %v1873_v25, %s1703_s16  ;;  %s1711_s16 = smov 56  }
 0x218   : > { %v1461_v28 = vpop.f32.mrf.mxu0 }
 0x219   : > { %654 = vrot.lane.b32.xlu0 %v537_v27, %s1704_s20  ;;  %s1712_s20 = smov 48  }
 0x21b   : > { %656 = vrot.lane.b32.xlu1 %v1873_v25, %s1705_s21  ;;  %s1713_s21 = smov 40  }
 0x21f   : > { %775 = vrot.lane.b32.xlu1 %v1873_v25, %s1706_s22  ;;  %s1714_s22 = smov 8  }
 0x223   : > { %773 = vrot.lane.b32.xlu1 %v537_v27, %s1707_s23 }
 0x227   : > { %894 = vrot.lane.b32.xlu1 %v1873_v25, %s1708_s24 }
 0x22b   : > { %892 = vrot.lane.b32.xlu1 %v537_v27, %s1709_s30  ;;  %s429_s30 = sand.u32 1, %s1691_s26  }
 0x289   : > { %v541_v29 = vpop.permute.xlu1 %540 }
 0x28a   : > { %v547_v30 = vsel %vm542_vm2, %v541_v29, 0 }
 0x28b   : > { %1463 = vmatpush3.bf16.xpose.msra.mxu0 %v547_v30  ;;  %v655_v34 = vpop.permute.xlu0 %654 }
 0x28c   : > { %1468 = vmatprep.subr.bf16.mxu0 %v1701_v8 }
 0x28d   : > { %v657_v31 = vpop.permute.xlu1 %656 }
 0x28e   : > { %v662_v32 = vsel %vm542_vm2, %v657_v31, 0 }
 0x28f   : > { %1475 = vmatpush3.bf16.xpose.msra.mxu1 %v662_v32 }
 0x290   : > { %1486 = vmatprep.subr.bf16.mxu1 %v1701_v8 }
 0x291   : > { %v776_v33 = vpop.permute.xlu1 %775 }
 0x292   : > { %1465 = vmatmul.mubr.msk.bf16.vlgmr.msra.gmra.mxu0 %vm542_vm2, %v537_v27  ;;  %v781_v36 = vsel %vm542_vm2, %v776_v33, 0 }
 0x293   : > { %1470 = vmatprep.mubr.msk.bf16.mxu0 %vm1702_vm1, %v1701_v8 }
 0x295   : > { %v774_v35 = vpop.permute.xlu1 %773 }
 0x296   : > { %1477 = vmatmul.mubr.msk.bf16.vlgmr.msra.gmra.mxu1 %vm542_vm2, %v655_v34 }
 0x297   : > { %1487 = vmatpush3.bf16.xpose.msra.mxu1 %v781_v36  ;;  %1488 = vmatprep.mubr.msk.bf16.mxu1 %vm1702_vm1, %v1701_v8 }
 0x298   : > { %1498 = vmatprep.subr.bf16.mxu1 %v1701_v8 }
 0x299   : > { %v895_v37 = vpop.permute.xlu1 %894 }
 0x29a   : > { %v900_v38 = vsel %vm542_vm2, %v895_v37, 0 }
 0x29d   : > { %v893_v39 = vpop.permute.xlu1 %892 }
 0x29e   : > { %1489 = vmatmul.mubr.msk.bf16.vlgmr.msra.gmra.mxu1 %vm542_vm2, %v774_v35 }
 0x29f   : > { %1499 = vmatpush3.bf16.xpose.msra.mxu1 %v900_v38  ;;  %1500 = vmatprep.mubr.msk.bf16.mxu1 %vm1702_vm1, %v1701_v8 }
 0x2a0   : > { %1510 = vmatprep.subr.bf16.mxu1 %v1701_v8 }
 0x2a6   : > { %1501 = vmatmul.mubr.msk.bf16.vlgmr.msra.gmra.mxu1 %vm542_vm2, %v893_v39 }
 0x2a7   : > { %1514 = vmatprep.mubr.msk.bf16.mxu1 %vm1702_vm1, %v1701_v8 }
 0x352   : > { %v583_v40 = vpop.f32.mrf.mxu0 }
 0x353   : > { %v589_v41 = vsel %vm542_vm2, %v583_v40, -inf }
 0x354   : > { %590 = vmax.xlane.f32.xlu1 %v589_v41  ;;  %v1466_v42 = vpop.f32.mrf.mxu0 }
 0x356   : > { %v586_v43 = vpop.f32.mrf.mxu0  ;;  %v698_v44 = vpop.f32.mrf.mxu1 }
 0x357   : > { %v704_v45 = vsel %vm542_vm2, %v698_v44, -inf }
 0x358   : > { %705 = vmax.xlane.f32.xlu0 %v704_v45  ;;  %v1467_v46 = vpop.f32.mrf.mxu0  ;;  %v1478_v47 = vpop.f32.mrf.mxu1 }
 0x35a   : > { %v701_v48 = vpop.f32.mrf.mxu1 }
 0x35c   : > { %v1479_v49 = vpop.f32.mrf.mxu1 }
 0x35e   : > { %v817_v50 = vpop.f32.mrf.mxu1 }
 0x35f   : > { %v823_v59 = vsel %vm542_vm2, %v817_v50, -inf }
 0x360   : > { %v1490_v51 = vpop.f32.mrf.mxu1 }
 0x362   : > { %v820_v52 = vpop.f32.mrf.mxu1 }
 0x364   : > { %v1491_v53 = vpop.f32.mrf.mxu1 }
 0x365   : > { %600 = vrot.lane.b32.xlu1 %v1873_v25, %s1710_s15  ;;  %v1604_v53 = vld [vmem:[%s2056_s5] sm:$0xff]   ;;  %s1374_s15 = sshll.u32 %s429_s30, 3 }
 0x366   : > { %v936_v54 = vpop.f32.mrf.mxu1 }
 0x367   : > { %v942_v55 = vsel %vm542_vm2, %v936_v54, -inf }
 0x368   : > { %943 = vmax.xlane.f32.xlu0 %v942_v55  ;;  %v1502_v56 = vpop.f32.mrf.mxu1 }
 0x36a   : > { %v939_v57 = vpop.f32.mrf.mxu1 }
 0x36c   : > { %v1503_v58 = vpop.f32.mrf.mxu1 }
 0x37e   : > { %715 = vrot.lane.b32.xlu0 %v1873_v25, %s1711_s16  ;;  %s1715_s16 = smov 16  }
 0x389   : > { %824 = vmax.xlane.f32.xlu1 %v823_v59 }
 0x39a   : > { %834 = vrot.lane.b32.xlu1 %v1873_v25, %s1712_s20  ;;  %s1716_s20 = smov 24  }
 0x39e   : > { %953 = vrot.lane.b32.xlu1 %v1873_v25, %s1713_s21  ;;  %s1414_s21 = sshll.u32 %s1809_s29, 7  ;;  %s1298_s29 = scalar_lea.sflag [#allocation4], %s429_s30 }
 0x39f   : > { %s2009_s1 = scalar_lea.hbm %s2064_s13, %s1414_s21 }
 0x3dd   : > { %v591_v60 = vpop.xlane.xlu1 %590 }
 0x3de   : > { %v592_v61 = vsub.f32 %v583_v40, %v591_v60 }
 0x3e0   : > { %v593_v62 = vmul.f32 1.442695, %v592_v61 }
 0x3e1   : > { %v706_v63 = vpop.xlane.xlu0 %705  ;;  %v601_v1 = vpop.permute.xlu1 %600 }
 0x3e2   : > { %1617 = vpow2.f32 %v593_v62  ;;  %v707_v2 = vsub.f32 %v698_v44, %v706_v63  ;;  %v607_v3 = vsel %vm605_vm3, %v601_v1, 0 }
 0x3e3   : > { %1469 = vmatpush3.bf16.msra.mxu0 %v607_v3 }
 0x3e4   : > { %v708_v4 = vmul.f32 1.442695, %v707_v2  ;;  %1480 = vmatprep.subr.bf16.mxu0 %v1701_v8 }
 0x3e6   : > { %1619 = vpow2.f32 %v708_v4 }
 0x3ef   : > { %v1618_v5 = vpop.eup %1617 }
 0x3f0   : > { %v599_v6 = vpack.c.bf16 %v1618_v5, %v1618_v5  ;;  %v595_v18 = vsel %vm542_vm2, %v1618_v5, 0.0  ;;  %v1393_v5 = vld [vmem:[%s2057_s6] ss:$0 sm:$0xff] }
 0x3f1   : > { %v944_v7 = vpop.xlane.xlu0 %943 }
 0x3f2   : > { %v945_v9 = vsub.f32 %v936_v54, %v944_v7  ;;  %1471 = vmatmul.mubr.msk.bf16.vlgmr.msra.gmra.mxu0 %vm542_vm2, %v599_v6 }
 0x3f3   : > { %v1620_v10 = vpop.eup %1619  ;;  %1482 = vmatprep.mubr.msk.bf16.mxu0 %vm1702_vm1, %v1701_v8 }
 0x3f4   : > { %v946_v11 = vmul.f32 1.442695, %v945_v9  ;;  %v710_v12 = vsel %vm542_vm2, %v1620_v10, 0.0  ;;  %v714_v15 = vpack.c.bf16 %v1620_v10, %v1620_v10 }
 0x3f5   : > { %711 = vadd.xlane.f32.xlu0 %v710_v12  ;;  %v716_v13 = vpop.permute.xlu0 %715 }
 0x3f6   : > { %1621 = vpow2.f32 %v946_v11  ;;  %v721_v14 = vsel %vm605_vm3, %v716_v13, 0 }
 0x3f7   : > { %1481 = vmatpush3.bf16.msra.mxu0 %v721_v14 }
 0x3f8   : > { %1492 = vmatprep.subr.bf16.mxu0 %v1701_v8 }
 0x3fa   : > { %1483 = vmatmul.mubr.msk.bf16.vlgmr.msra.gmra.mxu0 %vm542_vm2, %v714_v15 }
 0x3fb   : > { %1494 = vmatprep.mubr.msk.bf16.mxu0 %vm1702_vm1, %v1701_v8 }
 0x403   : > { %v1622_v16 = vpop.eup %1621 }
 0x404   : > { %v948_v17 = vsel %vm542_vm2, %v1622_v16, 0.0  ;;  %v952_v29 = vpack.c.bf16 %v1622_v16, %v1622_v16 }
 0x405   : > { %949 = vadd.xlane.f32.xlu0 %v948_v17 }
 0x409   : > { %596 = vadd.xlane.f32.xlu0 %v595_v18 }
 0x412   : > { %v825_v19 = vpop.xlane.xlu1 %824 }
 0x413   : > { %v826_v20 = vsub.f32 %v817_v50, %v825_v19  ;;  %v1603_v50 = vld [vmem:[%s2056_s5 + $0x8] sm:$0xff]  }
 0x414   : > { %1511 = vmatpush3.bf16.msra.mxu1 %v1603_v50  ;;  %v1605_v19 = vld [vmem:[%s2060_s9 + $0x8] sm:$0xff]   ;;  %v1404_v50 = vld [vmem:[%s2063_s12] ss:$0 sm:$0xff] }
 0x415   : > { %v827_v21 = vmul.f32 1.442695, %v826_v20  ;;  %1512 = vmatprep.subr.bf16.mxu1 %v1701_v8 }
 0x416   : > { %v835_v22 = vpop.permute.xlu1 %834 }
 0x417   : > { %1623 = vpow2.f32 %v827_v21  ;;  %v840_v23 = vsel %vm605_vm3, %v835_v22, 0 }
 0x418   : > { %1493 = vmatpush3.bf16.msra.mxu0 %v840_v23  ;;  %1513 = vmatpush3.bf16.msra.mxu1 %v1604_v53 }
 0x419   : > { %1504 = vmatprep.subr.bf16.mxu0 %v1701_v8  ;;  %1526 = vmatprep.subr.bf16.mxu1 %v1701_v8 }
 0x41a   : > { %v954_v25 = vpop.permute.xlu1 %953 }
 0x41b   : > { %v959_v28 = vsel %vm605_vm3, %v954_v25, 0 }
 0x424   : > { %v1624_v24 = vpop.eup %1623 }
 0x425   : > { %v829_v26 = vsel %vm542_vm2, %v1624_v24, 0.0  ;;  %v833_v27 = vpack.c.bf16 %v1624_v24, %v1624_v24  ;;  %v1397_v24 = vld [vmem:[%s2058_s7] ss:$0 sm:$0xff] }
 0x426   : > { %830 = vadd.xlane.f32.xlu1 %v829_v26  ;;  %v1398_v26 = vld [vmem:[%s2059_s8] ss:$0 sm:$0xff] }
 0x427   : > { %1495 = vmatmul.mubr.msk.bf16.vlgmr.msra.gmra.mxu0 %vm542_vm2, %v833_v27 }
 0x428   : > { %1505 = vmatpush3.bf16.msra.mxu0 %v959_v28  ;;  %1506 = vmatprep.mubr.msk.bf16.mxu0 %vm1702_vm1, %v1701_v8 }
 0x429   : > { %1518 = vmatprep.subr.bf16.mxu0 %v1701_v8 }
 0x42f   : > { %1507 = vmatmul.mubr.msk.bf16.vlgmr.msra.gmra.mxu0 %vm542_vm2, %v952_v29 }
 0x430   : > { %1522 = vmatprep.mubr.msk.bf16.mxu0 %vm1702_vm1, %v1701_v8  ;;  %1519 = vmatpush3.bf16.msra.mxu0 %v1605_v19 }
 0x431   : > { %1520 = vmatprep.subr.bf16.mxu0 %v1701_v8 }
 0x47e   : > { %v712_v30 = vpop.xlane.xlu0 %711 }
 0x48e   : > { %v950_v31 = vpop.xlane.xlu0 %949 }
 0x492   : > { %v597_v32 = vpop.xlane.xlu0 %596 }
 0x493   : > { %1625 = vrcp.f32 %v597_v32  ;;  %v1609_v32 = vld [vmem:[%s2062_s11 + $0x28] sm:$0xff]  }
 0x494   : > { %1627 = vrcp.f32 %v712_v30  ;;  %v1607_v30 = vld [vmem:[%s2062_s11 + $0x38] sm:$0xff]  }
 0x4a0   : > { %v1626_v33 = vpop.eup %1625 }
 0x4a1   : > { %v1628_v40 = vpop.eup %1627 }
 0x4af   : > { %v831_v47 = vpop.xlane.xlu1 %830 }
 0x4b0   : > { %1629 = vrcp.f32 %v831_v47 }
 0x4b1   : > { %1631 = vrcp.f32 %v950_v31  ;;  %v1608_v31 = vld [vmem:[%s2062_s11 + $0x30] sm:$0xff]  }
 0x4b2   : > { %v643_v34 = vpop.f32.mrf.mxu0 }
 0x4b3   : > { %v649_v35 = vmul.f32 %v1626_v33, %v643_v34  ;;  %v1610_v33 = vld [vmem:[%s2062_s11 + $0x20] sm:$0xff]   ;;  %v1611_v34 = vld [vmem:[%s2062_s11 + $0x18] sm:$0xff]  }
 0x4b4   : > { %v1472_v36 = vpop.f32.mrf.mxu0 }
 0x4b5   : > { %v650_v37 = vpack.c.bf16 %v649_v35, %v649_v35  ;;  %v1612_v35 = vld [vmem:[%s2062_s11 + $0x10] sm:$0xff]   ;;  %v1613_v36 = vld [vmem:[%s2062_s11 + $0x8] sm:$0xff]  }
 0x4b6   : > { %v646_v38 = vpop.f32.mrf.mxu0 }
 0x4b7   : > { %652 = vst.msk [vmem:[#allocation2] sm:$0xf] %vm651_vm4, %v650_v37  ;;  %v1614_v37 = vld [vmem:[%s2062_s11] sm:$0xff]  }
 0x4b8   : > { %v1473_v39 = vpop.f32.mrf.mxu0  ;;  %v1399_v38 = vld [vmem:[%s2061_s10] ss:$0 sm:$0xff] }
 0x4ba   : > { %v757_v41 = vpop.f32.mrf.mxu0 }
 0x4bb   : > { %v763_v42 = vmul.f32 %v1628_v40, %v757_v41 }
 0x4bc   : > { %v1484_v43 = vpop.f32.mrf.mxu0 }
 0x4bd   : > { %v1417_v44 = vpack.c.bf16 %v763_v42, %v763_v42  ;;  %v1630_v48 = vpop.eup %1629 }
 0x4be   : > { %v760_v45 = vpop.f32.mrf.mxu0  ;;  %v1632_v57 = vpop.eup %1631 }
 0x4bf   : > { %768 = vrot.lane.b32.xlu1 %v1417_v44, %s1714_s22  ;;  %s431_s22 = scalar_lea.vmem [#allocation3], %s1374_s15 }
 0x4c0   : > { %v1485_v46 = vpop.f32.mrf.mxu0  ;;  %s1311_s23 = sshll.u32 %s431_s22, 4  ;;  %s2011_s23 = int_to_ptr.vmem [resolvable:$true] %s1311_s23 }
 0x4c1   : > { %s1639_s15 = scalar_lea.vmem %s2011_s23, 128 }
 0x4c2   : > { %p1640_p11 = scmp.ne.s32.totalorder %s2011_s23, %s1639_s15 }
 0x4c4   : > { %p1641_p12 = pnand %p1640_p11, %p1826_p5 }
 0x4c6   : > { %p1642_p13 = pneg %p1641_p12 }
 0x4e7   : > { %v876_v49 = vpop.f32.mrf.mxu0 }
 0x4e8   : > { %v882_v51 = vmul.f32 %v1630_v48, %v876_v49 }
 0x4e9   : > { %v1496_v52 = vpop.f32.mrf.mxu0 }
 0x4ea   : > { %v1418_v54 = vpack.c.bf16 %v882_v51, %v882_v51 }
 0x4eb   : > { %v879_v55 = vpop.f32.mrf.mxu0 }
 0x4ec   : > { %887 = vrot.lane.b32.xlu0 %v1418_v54, %s1715_s16  ;;  %s1717_s16 = smov [#allocation3]  }
 0x4ed   : > { %v1497_v56 = vpop.f32.mrf.mxu0 }
 0x4ef   : > { %v995_v58 = vpop.f32.mrf.mxu0 }
 0x4f0   : > { %v1001_v59 = vmul.f32 %v1632_v57, %v995_v58 }
 0x4f1   : > { %v1508_v60 = vpop.f32.mrf.mxu0 }
 0x4f2   : > { %v1419_v61 = vpack.c.bf16 %v1001_v59, %v1001_v59 }
 0x4f3   : > { %v998_v62 = vpop.f32.mrf.mxu0 }
 0x4f4   : > { %1006 = vrot.lane.b32.xlu1 %v1419_v61, %s1716_s20  ;;  %s1643_s20 = sshll.u32 %s1717_s16, 4  ;;  %s1644_s20 = int_to_ptr.vmem [resolvable:$false] %s1643_s20 }
 0x4f5   : > { %v1509_v63 = vpop.f32.mrf.mxu0  ;;  %s1645_s0 = scalar_lea.vmem %s1644_s20, 256  ;;  %p1646_p0 = scmp.lt.s32.totalorder %s2011_s23, %s1644_s20 }
 0x4f6   : > { %p1647_p1 = scmp.lt.s32.totalorder %s1645_s0, %s1639_s15 }
 0x4f8   : > { %p1648_p2 = por %p1647_p1, %p1646_p0 }
 0x4fa   : > { %p1649_p3 = pnand %p1648_p2, %p1642_p13 }
 0x531   : > { %v769_v1 = vpop.permute.xlu1 %768 }
 0x532   : > { %772 = vst.msk [vmem:[#allocation2] sm:$0xf] %vm771_vm5, %v769_v1 }
 0x55e   : > { %v888_v2 = vpop.permute.xlu0 %887 }
 0x55f   : > { %891 = vst.msk [vmem:[#allocation2] sm:$0xf] %vm890_vm6, %v888_v2 }
 0x566   : > { %v1007_v3 = vpop.permute.xlu1 %1006 }
 0x567   : > { %1010 = vst.msk [vmem:[#allocation2] sm:$0xf] %vm1009_vm7, %v1007_v3 }
 0x56e   : > { %v1011_v4 = vld [vmem:[#allocation2] sm:$0xf] }
 0x56f   : > { %1515 = vmatmul.mubr.msk.bf16.vlgmr.msra.gmra.mxu1 %vm438_vm0, %v1011_v4 }
 0x570   : > { %1542 = vmatprep.mubr.msk.bf16.mxu1 %vm1702_vm1, %v1701_v8  ;;  %1527 = vmatpush3.bf16.msra.mxu1 %v1607_v30 }
 0x571   : > { %1528 = vmatprep.subr.bf16.mxu1 %v1701_v8 }
 0x574   : > { %1529 = vmatpush3.bf16.msra.mxu1 %v1608_v31 }
 0x575   : > { %1530 = vmatprep.subr.bf16.mxu1 %v1701_v8 }
 0x578   : > { %1531 = vmatpush3.bf16.msra.mxu1 %v1609_v32 }
 0x579   : > { %1532 = vmatprep.subr.bf16.mxu1 %v1701_v8 }
 0x57c   : > { %1533 = vmatpush3.bf16.msra.mxu1 %v1610_v33 }
 0x57d   : > { %1534 = vmatprep.subr.bf16.mxu1 %v1701_v8 }
 0x580   : > { %1535 = vmatpush3.bf16.msra.mxu1 %v1611_v34 }
 0x581   : > { %1536 = vmatprep.subr.bf16.mxu1 %v1701_v8 }
 0x584   : > { %1537 = vmatpush3.bf16.msra.mxu1 %v1612_v35 }
 0x585   : > { %1538 = vmatprep.subr.bf16.mxu1 %v1701_v8 }
 0x588   : > { %1539 = vmatpush3.bf16.msra.mxu1 %v1613_v36 }
 0x589   : > { %1540 = vmatprep.subr.bf16.mxu1 %v1701_v8 }
 0x58c   : > { %1541 = vmatpush3.bf16.msra.mxu1 %v1614_v37 }
 0x62f   : > { %v1072_v6 = vpop.f32.mrf.mxu1 }
 0x630   : > { %v1073_v7 = vadd.f32 %v1393_v5, %v1072_v6 }
 0x631   : > { %v1516_v9 = vpop.f32.mrf.mxu1 }
 0x632   : > { %v1946_v10 = vadd.f32 %v1073_v7, %v1841_v0  ;;  %v1606_v0 = vld [vmem:[%s2060_s9] sm:$0xff]  }
 0x633   : > { %v1075_v11 = vpop.f32.mrf.mxu1  ;;  %1521 = vmatpush3.bf16.msra.mxu0 %v1606_v0 }
 0x634   : > { %v1079_v12 = vsel %vm438_vm0, %v1946_v10, 0.0 }
 0x635   : > { %1080 = vadd.xlane.f32.xlu1 %v1079_v12  ;;  %v1517_v13 = vpop.f32.mrf.mxu1 }
 0x6be   : > { %v1081_v14 = vpop.xlane.xlu1 %1080 }
 0x6bf   : > { %v1082_v15 = vmul.f32 0.03125, %v1081_v14 }
 0x6c1   : > { %v1083_v16 = vsub.f32 %v1946_v10, %v1082_v15 }
 0x6c3   : > { %v1084_v17 = vmul.f32 %v1083_v16, %v1083_v16 }
 0x6c5   : > { %v1085_v18 = vsel %vm438_vm0, %v1084_v17, 0.0 }
 0x6c6   : > { %1086 = vadd.xlane.f32.xlu0 %v1085_v18 }
 0x74f   : > { %v1087_v20 = vpop.xlane.xlu0 %1086 }
 0x750   : > { %v1088_v21 = vmul.f32 0.03125, %v1087_v20 }
 0x752   : > { %v1089_v22 = vadd.f32 1e-05, %v1088_v21 }
 0x754   : > { %1633 = vrsqrt.f32 %v1089_v22 }
 0x761   : > { %v1634_v23 = vpop.eup %1633 }
 0x762   : > { %v1091_v25 = vmul.f32 %v1634_v23, %v1083_v16 }
 0x764   : > { %v1099_v27 = vmul.f32 %v1397_v24, %v1091_v25 }
 0x766   : > { %v1107_v28 = vadd.f32 %v1398_v26, %v1099_v27 }
 0x768   : > { %v1108_v29 = vpack.c.bf16 %v1107_v28, %v1107_v28 }
 0x76a   : > { %1523 = vmatmul.mubr.msk.bf16.vlgmr.msra.gmra.mxu0 %vm438_vm0, %v1108_v29 }
 0x82a   : > { %v1169_v39 = vpop.f32.mrf.mxu0 }
 0x82b   : > { %v1170_v40 = vadd.f32 %v1399_v38, %v1169_v39 }
 0x82c   : > { %v1524_v41 = vpop.f32.mrf.mxu0 }
 0x82d   : > { %v1403_v42 = vmul.f32 -1.702, %v1170_v40 }
 0x82e   : > { %v1172_v43 = vpop.f32.mrf.mxu0 }
 0x82f   : > { %v1177_v44 = vmul.f32 1.442695, %v1403_v42 }
 0x830   : > { %v1525_v45 = vpop.f32.mrf.mxu0 }
 0x831   : > { %1635 = vpow2.f32 %v1177_v44 }
 0x83e   : > { %v1636_v8 = vpop.eup %1635 }
 0x83f   : > { %v1179_v46 = vadd.f32 1.0, %v1636_v8 }
 0x841   : > { %1637 = vrcp.f32 %v1179_v46 }
 0x84e   : > { %v1638_v47 = vpop.eup %1637 }
 0x84f   : > { %v1182_v48 = vmul.f32 %v1638_v47, %v1170_v40 }
 0x851   : > { %v1183_v49 = vpack.c.bf16 %v1182_v48, %v1182_v48 }
 0x853   : > { %1543 = vmatmul.mubr.bf16.vlgmr.msra.gmra.mxu1 %v1183_v49 }
 0x913   : > { %v1289_v51 = vpop.f32.mrf.mxu1 }
 0x914   : > { %v1290_v52 = vadd.f32 %v1404_v50, %v1289_v51 }
 0x915   : > { %v1544_v53 = vpop.f32.mrf.mxu1 }
 0x916   : > { %v1295_v54 = vadd.f32 %v1290_v52, %v1946_v10 }
 0x917   : > { %v1292_v55 = vpop.f32.mrf.mxu1 }
 0x918   : > { %1296 = vst.msk [vmem:[%s431_s22] sm:$0xff] %vm438_vm0, %v1295_v54 }
 0x919   : > { %v1545_v56 = vpop.f32.mrf.mxu1 }
 0x91a   : > { %1652 = shalt.err (!%p1649_p3)
}
 0x91b   : > { %s1653_s21 = scalar_lea.hbm %s2009_s1, 128  ;;  %s1657_s24 = scalar_lea.hbm %s2064_s13, 256 }
 0x91c   : > { %p1654_p4 = scmp.ne.s32.totalorder %s2009_s1, %s1653_s21  ;;  %p1658_p9 = scmp.lt.s32.totalorder %s2009_s1, %s2064_s13 }
 0x91d   : > { %p1659_p10 = scmp.lt.s32.totalorder %s1657_s24, %s1653_s21 }
 0x91e   : > { %p1655_p7 = pnand %p1654_p4, %p1826_p5 }
 0x91f   : > { %p1660_p11 = por %p1659_p10, %p1658_p9 }
 0x920   : > { %p1656_p8 = pneg %p1655_p7 }
 0x922   : > { %p1661_p12 = pnand %p1660_p11, %p1656_p8 }
 0x924   : > { %1664 = shalt.err (!%p1661_p12)
}
 0x925   : > { %1546 = dma.vmem_to_hbm [thread:$0]  (%p1826_p5), %s2011_s23, 128, %s2009_s1, %s1298_s29  }
 0x926 PF: > { %p1552_p13 = scmp.ge.s32.totalorder %s1699_s28, 2  ;;  %s1323_s15 = sand.u32 1, %s1687_s25  }
 0x927   : > { %s1324_s2 = scalar_lea.sflag [#allocation4], %s1323_s15 }
 0x928   : > { %p1549_p0 = pnand %p1552_p13, %p1830_p6 }
 0x92a   : > { %p1550_p1 = pneg %p1549_p0 }
 0x92c   : > { %1682 = dma.done.wait (%p1550_p1), %s1324_s2, 128  }
 0x92d   : > { %1684 = vsyncadd (%p1550_p1), %s1324_s2, 4294967168  ;;  %p23_p2 = scmp.ge.s32.totalorder %s1813_s14, 4   ;;  %s2073_s25 = smov %s1691_s26 }
 0x92e   : > { %s2074_s26 = smov %s1695_s27  ;;  %s2075_s27 = smov %s1824_s17 }
 0x92f   : > { %s2076_s28 = smov %s1813_s14  ;;  %25 = sbr.rel (!%p23_p2) target bundleno = 7 (0x7), region = 107 }
 0x934   :  { %1329 = vsyncpa [#allocation4], 1 }
 0x935   :  { %1331 = vsyncpa [#allocation4 + $0x1], 1 }

</bundles_post_ra>
